<compile_context>
chip_gen: v7x
topology: tpu7x:2x2x1
jax: 0.10.0
libtpu: 0.0.40
codegen_flags: <defaults>
</compile_context>

<pallas_src>
import functools

import jax
import jax.numpy as jnp
from jax import lax
from jax.experimental import pallas as pl
from jax.experimental.pallas import tpu as pltpu

LANE = 128      # vreg lane width  -> lane-dense last dims
SUBLANE = 8     # vreg sublane width


def _round_up(v, m):
    return (v + m - 1) // m * m


# --------------------------------------------------------------------------
# Fused kernel: all GCN layers + bias + ReLU + masked log_softmax.
# Only the final (padded, lane-dense) logits slab is written back to HBM.
# --------------------------------------------------------------------------
def fused_gcn_kernel(adj_ref, x_ref, *refs, num_layers, nclass, prop_first,
                     matmul_dtype):
    w_refs = refs[:num_layers]
    b_refs = refs[num_layers:2 * num_layers]
    o_ref = refs[2 * num_layers]

    adj_mm = adj_ref[...].astype(matmul_dtype)   # loaded/cast once, reused
    x = x_ref[...]

    for i in range(num_layers):
        w = w_refs[i][...].astype(matmul_dtype)
        b = b_refs[i][...]                       # [1, F_out] broadcast, once/layer
        xm = x.astype(matmul_dtype)
        if prop_first[i]:
            # (Ahat @ x) @ W  -- cheaper when F_in < F_out
            h = jnp.dot(adj_mm, xm, preferred_element_type=jnp.float32)
            h = jnp.dot(h.astype(matmul_dtype), w,
                        preferred_element_type=jnp.float32)
        else:
            # Ahat @ (x @ W)  -- cheaper when F_in >= F_out
            h = jnp.dot(xm, w, preferred_element_type=jnp.float32)
            h = jnp.dot(adj_mm, h.astype(matmul_dtype),
                        preferred_element_type=jnp.float32)
        h = h + b
        if i < num_layers - 1:
            x = jnp.maximum(h, 0.0)      # ReLU; dropout == identity in eval
        else:
            x = h

    # Masked, numerically stable log_softmax over the real class columns only
    # (columns >= nclass are zero padding kept for lane-dense stores).
    col = lax.broadcasted_iota(jnp.int32, x.shape, 1)
    valid = col < nclass
    logits = jnp.where(valid, x, jnp.float32(-1e30))
    m = jnp.max(logits, axis=-1, keepdims=True)
    z = logits - m
    p = jnp.where(valid, jnp.exp(z), 0.0)
    lse = jnp.log(jnp.sum(p, axis=-1, keepdims=True))
    o_ref[...] = (z - lse).astype(o_ref.dtype)


# --------------------------------------------------------------------------
# Wrapper: pad to (8,128)-friendly shapes, call the fused kernel, slice back.
# --------------------------------------------------------------------------
def _full_spec(shape):
    # Full-array block (no grid): block_shape == array shape.
    return pl.BlockSpec(shape, lambda: (0,) * len(shape))


def gcn_forward(params, x, adj, dropout_p=0.5, training=False,
                matmul_dtype=jnp.float32):
    """Fused GCN forward.  `matmul_dtype=jnp.bfloat16` halves adjacency HBM
    traffic and doubles MXU throughput on v6e/v7x (f32 accumulation kept)."""
    # TODO(synk): training-time dropout (pltpu.prng_random_bits) not
    # implemented; this matches eval mode where F.dropout is the identity.
    del dropout_p, training
    n, nfeat = x.shape
    num_layers = len(params)
    nclass = params[-1][0].shape[1]

    # ---- zero-pad everything to lane/sublane friendly shapes --------------
    n_pad = _round_up(n, LANE)
    dims = [nfeat] + [w.shape[1] for w, _ in params]
    dims_pad = [_round_up(d, LANE) for d in dims]

    adj_p = jnp.zeros((n_pad, n_pad), jnp.float32).at[:n, :n].set(adj)
    x_p = jnp.zeros((n_pad, dims_pad[0]), jnp.float32).at[:n, :nfeat].set(x)
    ws_p, bs_p = [], []
    for i, (w, b) in enumerate(params):
        wp = jnp.zeros((dims_pad[i], dims_pad[i + 1]), jnp.float32)
        ws_p.append(wp.at[:dims[i], :dims[i + 1]].set(w))
        bp = jnp.zeros((1, dims_pad[i + 1]), jnp.float32)
        bs_p.append(bp.at[:, :dims[i + 1]].set(b.reshape(1, -1)))

    # Contract the smaller feature dim against the N x N adjacency.
    prop_first = tuple(dims_pad[i] < dims_pad[i + 1] for i in range(num_layers))

    # TODO(synk): for large N (adjacency no longer VMEM-resident, esp. v7x's
    # 64 MiB) switch to a row-tiled grid over Ahat per layer (or a sparse
    # scalar-prefetch gather); single full-array block is optimal at demo size.
    kernel = functools.partial(
        fused_gcn_kernel, num_layers=num_layers, nclass=nclass,
        prop_first=prop_first, matmul_dtype=matmul_dtype)

    inputs = [adj_p, x_p] + ws_p + bs_p
    out_pad = pl.pallas_call(
        kernel,
        out_shape=jax.ShapeDtypeStruct((n_pad, dims_pad[-1]), jnp.float32),
        in_specs=[_full_spec(a.shape) for a in inputs],
        out_specs=_full_spec((n_pad, dims_pad[-1])),
        compiler_params=pltpu.CompilerParams(
            vmem_limit_bytes=48 * 1024 * 1024),
    )(*inputs)

    return out_pad[:n, :nclass]


# --------------------------------------------------------------------------
# Parameter / input construction + pure-JAX reference
# --------------------------------------------------------------------------
def init_gcn_params(key, nfeat, nhid, nclass, num_layers):
    """Glorot-uniform weights, zero bias (GCNConv defaults), deterministic."""
    dims = [nfeat] + [nhid] * (num_layers - 1) + [nclass]
    params = []
    for i in range(num_layers):
        key, wk = jax.random.split(key)
        fan_in, fan_out = dims[i], dims[i + 1]
        limit = jnp.sqrt(6.0 / (fan_in + fan_out))
        w = jax.random.uniform(wk, (fan_in, fan_out), jnp.float32, -limit, limit)
        b = jnp.zeros((1, fan_out), jnp.float32)
        params.append((w, b))
    return params


def build_normalized_adjacency(key, n):
    """Ahat = D^-1/2 (A + I) D^-1/2 from a deterministic random undirected graph."""
    a = (jax.random.uniform(key, (n, n)) < 0.3).astype(jnp.float32)
    a = jnp.maximum(a, a.T)
    a = a * (1.0 - jnp.eye(n)) + jnp.eye(n)
    deg = jnp.sum(a, axis=-1)
    d_inv_sqrt = 1.0 / jnp.sqrt(deg)
    return a * d_inv_sqrt[:, None] * d_inv_sqrt[None, :]


def gcn_reference(params, x, adj):
    h = x
    for w, b in params[:-1]:
        h = jnp.maximum(adj @ (h @ w) + b, 0.0)
    w, b = params[-1]
    h = adj @ (h @ w) + b
    return jax.nn.log_softmax(h, axis=-1)


# --------------------------------------------------------------------------
if __name__ == "__main__":
    key = jax.random.PRNGKey(0)
    k_x, k_adj, k_p = jax.random.split(key, 3)

    # Small, forward-consistent shapes.
    N_NODES, NFEAT, NHID, NCLASS, NUM_LAYERS = 8, 16, 32, 8, 3

    x = jax.random.normal(k_x, (N_NODES, NFEAT), jnp.float32)
    adj = build_normalized_adjacency(k_adj, N_NODES)
    params = init_gcn_params(k_p, NFEAT, NHID, NCLASS, NUM_LAYERS)

    out = gcn_forward(params, x, adj)
    out = jax.block_until_ready(out)

    assert out.shape == (N_NODES, NCLASS)
    # log_softmax rows should exponentiate-sum to ~1.
    row_sums = jnp.sum(jnp.exp(out), axis=-1)
    assert jnp.allclose(row_sums, 1.0, atol=1e-5), row_sums
    # Match the pure-JAX reference.
    ref = gcn_reference(params, x, adj)
    assert jnp.allclose(out, ref, atol=1e-4, rtol=1e-4), jnp.abs(out - ref).max()

    print("KERNEL_OK")
</pallas_src>

<mosaic_0001>
module attributes {stable_mosaic.version = 11 : i64} {
  func.func @fused_gcn_kernel(%arg0: memref<128x128xf32, #tpu.memory_space<vmem>>, %arg1: memref<128x128xf32, #tpu.memory_space<vmem>>, %arg2: memref<128x128xf32, #tpu.memory_space<vmem>>, %arg3: memref<128x128xf32, #tpu.memory_space<vmem>>, %arg4: memref<128x128xf32, #tpu.memory_space<vmem>>, %arg5: memref<1x128xf32, #tpu.memory_space<vmem>>, %arg6: memref<1x128xf32, #tpu.memory_space<vmem>>, %arg7: memref<1x128xf32, #tpu.memory_space<vmem>>, %arg8: memref<128x128xf32, #tpu.memory_space<vmem>>) attributes {dimension_semantics = [], scalar_prefetch = 0 : i64, scratch_operands = 0 : i64, tpu.core_type = #tpu.core_type<tc>} {
    %c0 = arith.constant 0 : index
    %c0_0 = arith.constant 0 : index
    %0 = vector.load %arg0[%c0, %c0_0] : memref<128x128xf32, #tpu.memory_space<vmem>>, vector<128x128xf32>
    %c0_1 = arith.constant 0 : index
    %c0_2 = arith.constant 0 : index
    %1 = vector.load %arg1[%c0_1, %c0_2] : memref<128x128xf32, #tpu.memory_space<vmem>>, vector<128x128xf32>
    %c0_3 = arith.constant 0 : index
    %c0_4 = arith.constant 0 : index
    %2 = vector.load %arg2[%c0_3, %c0_4] : memref<128x128xf32, #tpu.memory_space<vmem>>, vector<128x128xf32>
    %c0_5 = arith.constant 0 : index
    %c0_6 = arith.constant 0 : index
    %3 = vector.load %arg5[%c0_5, %c0_6] : memref<1x128xf32, #tpu.memory_space<vmem>>, vector<1x128xf32>
    %cst = arith.constant dense<0.000000e+00> : vector<128x128xf32>
    %4 = tpu.matmul %1, %2, %cst {dimension_numbers = #tpu.dot_dimension_numbers<[1], [0], [0], [1], [0, 0, 1, 1], [], []>} : vector<128x128xf32>, vector<128x128xf32>, vector<128x128xf32> -> vector<128x128xf32>
    %cst_7 = arith.constant dense<0.000000e+00> : vector<128x128xf32>
    %5 = tpu.matmul %0, %4, %cst_7 {dimension_numbers = #tpu.dot_dimension_numbers<[1], [0], [0], [1], [0, 0, 1, 1], [], []>} : vector<128x128xf32>, vector<128x128xf32>, vector<128x128xf32> -> vector<128x128xf32>
    %6 = vector.broadcast %3 : vector<1x128xf32> to vector<128x128xf32>
    %7 = arith.addf %5, %6 : vector<128x128xf32>
    %cst_8 = arith.constant 0.000000e+00 : f32
    %8 = vector.broadcast %cst_8 : f32 to vector<128x128xf32>
    %9 = arith.maximumf %7, %8 : vector<128x128xf32>
    %c0_9 = arith.constant 0 : index
    %c0_10 = arith.constant 0 : index
    %10 = vector.load %arg3[%c0_9, %c0_10] : memref<128x128xf32, #tpu.memory_space<vmem>>, vector<128x128xf32>
    %c0_11 = arith.constant 0 : index
    %c0_12 = arith.constant 0 : index
    %11 = vector.load %arg6[%c0_11, %c0_12] : memref<1x128xf32, #tpu.memory_space<vmem>>, vector<1x128xf32>
    %cst_13 = arith.constant dense<0.000000e+00> : vector<128x128xf32>
    %12 = tpu.matmul %9, %10, %cst_13 {dimension_numbers = #tpu.dot_dimension_numbers<[1], [0], [0], [1], [0, 0, 1, 1], [], []>} : vector<128x128xf32>, vector<128x128xf32>, vector<128x128xf32> -> vector<128x128xf32>
    %cst_14 = arith.constant dense<0.000000e+00> : vector<128x128xf32>
    %13 = tpu.matmul %0, %12, %cst_14 {dimension_numbers = #tpu.dot_dimension_numbers<[1], [0], [0], [1], [0, 0, 1, 1], [], []>} : vector<128x128xf32>, vector<128x128xf32>, vector<128x128xf32> -> vector<128x128xf32>
    %14 = vector.broadcast %11 : vector<1x128xf32> to vector<128x128xf32>
    %15 = arith.addf %13, %14 : vector<128x128xf32>
    %cst_15 = arith.constant 0.000000e+00 : f32
    %16 = vector.broadcast %cst_15 : f32 to vector<128x128xf32>
    %17 = arith.maximumf %15, %16 : vector<128x128xf32>
    %c0_16 = arith.constant 0 : index
    %c0_17 = arith.constant 0 : index
    %18 = vector.load %arg4[%c0_16, %c0_17] : memref<128x128xf32, #tpu.memory_space<vmem>>, vector<128x128xf32>
    %c0_18 = arith.constant 0 : index
    %c0_19 = arith.constant 0 : index
    %19 = vector.load %arg7[%c0_18, %c0_19] : memref<1x128xf32, #tpu.memory_space<vmem>>, vector<1x128xf32>
    %cst_20 = arith.constant dense<0.000000e+00> : vector<128x128xf32>
    %20 = tpu.matmul %17, %18, %cst_20 {dimension_numbers = #tpu.dot_dimension_numbers<[1], [0], [0], [1], [0, 0, 1, 1], [], []>} : vector<128x128xf32>, vector<128x128xf32>, vector<128x128xf32> -> vector<128x128xf32>
    %cst_21 = arith.constant dense<0.000000e+00> : vector<128x128xf32>
    %21 = tpu.matmul %0, %20, %cst_21 {dimension_numbers = #tpu.dot_dimension_numbers<[1], [0], [0], [1], [0, 0, 1, 1], [], []>} : vector<128x128xf32>, vector<128x128xf32>, vector<128x128xf32> -> vector<128x128xf32>
    %22 = vector.broadcast %19 : vector<1x128xf32> to vector<128x128xf32>
    %23 = arith.addf %21, %22 : vector<128x128xf32>
    %24 = tpu.iota {dimensions = array<i32: 1>} : vector<128x128xi32>
    %c8_i32 = arith.constant 8 : i32
    %25 = vector.broadcast %c8_i32 : i32 to vector<128x128xi32>
    %26 = arith.cmpi slt, %24, %25 : vector<128x128xi32>
    %cst_22 = arith.constant -1.000000e+30 : f32
    %27 = vector.broadcast %cst_22 : f32 to vector<128x128xf32>
    %28 = arith.select %26, %23, %27 : vector<128x128xi1>, vector<128x128xf32>
    %cst_23 = arith.constant dense<0xFF800000> : vector<128xf32>
    %29 = vector.multi_reduction <maximumf>, %28, %cst_23 [1] : vector<128x128xf32> to vector<128xf32>
    %30 = vector.shape_cast %29 : vector<128xf32> to vector<128x1xf32>
    %31 = vector.broadcast %30 : vector<128x1xf32> to vector<128x128xf32>
    %32 = arith.subf %28, %31 : vector<128x128xf32>
    %33 = math.exp %32 : vector<128x128xf32>
    %cst_24 = arith.constant 0.000000e+00 : f32
    %34 = vector.broadcast %cst_24 : f32 to vector<128x128xf32>
    %35 = arith.select %26, %33, %34 : vector<128x128xi1>, vector<128x128xf32>
    %cst_25 = arith.constant dense<0.000000e+00> : vector<128xf32>
    %36 = vector.multi_reduction <add>, %35, %cst_25 [1] : vector<128x128xf32> to vector<128xf32>
    %37 = vector.shape_cast %36 : vector<128xf32> to vector<128x1xf32>
    %38 = math.log %37 : vector<128x1xf32>
    %39 = vector.broadcast %38 : vector<128x1xf32> to vector<128x128xf32>
    %40 = arith.subf %32, %39 : vector<128x128xf32>
    %c0_26 = arith.constant 0 : index
    %c0_27 = arith.constant 0 : index
    %41 = vector.load %arg8[%c0_26, %c0_27] : memref<128x128xf32, #tpu.memory_space<vmem>>, vector<128x128xf32>
    tpu.vector_store %arg8[%c0_26, %c0_27], %40 {strides = array<i32>} : memref<128x128xf32, #tpu.memory_space<vmem>>, vector<128x128xf32>,
    return
  }
}

</mosaic_0001>

<bundles_post_ra>
// kernel: tpu_custom_call.1
= control target key start
LH: loop header
LB: loop body
LE: loop exit
PB: predicated region body
PF: predicated region fallthrough
CT: control target
= control target key end

     0   :  { %13 = vsyncpa [#allocation3], 0  ;;  %s2671_s0 = inlined_call_operand.hbm [shape: f32[128,128], index: 0, kind: input, shape index: {}]   ;;  %s2672_s1 = inlined_call_operand.hbm [shape: f32[128,128], index: 1, kind: input, shape index: {}]   ;;  %s2673_s2 = inlined_call_operand.hbm [shape: f32[128,128], index: 2, kind: input, shape index: {}]   ;;  %s2674_s3 = inlined_call_operand.hbm [shape: f32[128,128], index: 3, kind: input, shape index: {}]   ;;  %s2675_s4 = inlined_call_operand.hbm [shape: f32[128,128], index: 4, kind: input, shape index: {}]   ;;  %s2676_s5 = inlined_call_operand.vmem [shape: f32[1,128], index: 5, kind: input, shape index: {}]   ;;  %s2677_s6 = inlined_call_operand.vmem [shape: f32[1,128], index: 6, kind: input, shape index: {}]   ;;  %s2678_s7 = inlined_call_operand.vmem [shape: f32[1,128], index: 7, kind: input, shape index: {}]   ;;  %s2679_s8 = inlined_call_operand.hbm [shape: f32[128,128], index: 8, kind: output, shape index: {}]  }
   0x1   :  { %14 = vsyncpa [#allocation6], 0 }
   0x2   :  { %15 = vsyncpa [#allocation9], 0 }
   0x3   :  { %16 = vsyncpa [#allocation4], 0  ;;  %s2266_s27 = smov [#allocation5]   ;;  %s2267_s29 = smov [#allocation8]  }
   0x4   :  { %s34_s28 = sshll.u32 %s2266_s27, 4  ;;  %s58_s30 = sshll.u32 %s2267_s29, 4  ;;  %s35_s28 = int_to_ptr.vmem [resolvable:$true] %s34_s28  ;;  %s2319_s30 = int_to_ptr.vmem [resolvable:$true] %s58_s30 }
   0x5   :  { %s2126_s11 = scalar_lea.hbm %s2672_s1, 2048 }
   0x6   :  { %p2127_p0 = scmp.ne.s32.totalorder %s2672_s1, %s2126_s11  ;;  %p2130_p1 = scmp.lt.u32.totalorder %s2126_s11, %s2672_s1 }
   0x8   :  { %p2132_p2 = pnand %p2130_p1, %p2127_p0 }
   0xa   :  { %2135 = shalt.err (!%p2132_p2)
}
   0xb   :  { %s2136_s16 = scalar_lea.vmem %s35_s28, 2048  ;;  %p2141_p4 = scmp.lt.s32.totalorder %s35_s28, %s35_s28 }
   0xc   :  { %p2137_p3 = scmp.ne.s32.totalorder %s35_s28, %s2136_s16  ;;  %p2142_p5 = scmp.lt.s32.totalorder %s2136_s16, %s2136_s16 }
   0xe   :  { %p2143_p6 = por %p2142_p5, %p2141_p4 }
  0x10   :  { %p2144_p7 = pnand %p2143_p6, %p2137_p3 }
  0x12   :  { %2147 = shalt.err (!%p2144_p7)
}
  0x13   :  { %s2268_s17 = smov 128   ;;  %s2269_s18 = smov 8  }
  0x14   :  { %40 = dma.hbm_to_vmem [thread:$0]  %s2672_s1, 2048, %s35_s28, [#allocation6], %s2268_s17, %s2268_s17, %s2269_s18  }
  0x15   :  { %s2148_s23 = scalar_lea.hbm %s2674_s3, 2048 }
  0x16   :  { %p2149_p8 = scmp.ne.s32.totalorder %s2674_s3, %s2148_s23  ;;  %p2152_p9 = scmp.lt.u32.totalorder %s2148_s23, %s2674_s3 }
  0x18   :  { %p2154_p10 = pnand %p2152_p9, %p2149_p8 }
  0x1a   :  { %2157 = shalt.err (!%p2154_p10)
}
  0x1b   :  { %s2158_s29 = scalar_lea.vmem %s2319_s30, 2048  ;;  %p2163_p12 = scmp.lt.s32.totalorder %s2319_s30, %s2319_s30 }
  0x1c   :  { %p2159_p11 = scmp.ne.s32.totalorder %s2319_s30, %s2158_s29  ;;  %p2164_p13 = scmp.lt.s32.totalorder %s2158_s29, %s2158_s29 }
  0x1e   :  { %p2165_p0 = por %p2164_p13, %p2163_p12 }
  0x20   :  { %p2166_p1 = pnand %p2165_p0, %p2159_p11 }
  0x22   :  { %2169 = shalt.err (!%p2166_p1)
}
  0x23   :  { %64 = dma.hbm_to_vmem [thread:$0]  %s2674_s3, 2048, %s2319_s30, [#allocation9], %s2268_s17, %s2268_s17, %s2269_s18  }
  0x24   :  { %s2270_s9 = smov [#allocation2]   ;;  %s2271_s11 = smov [#allocation7]  }
  0x25   :  { %s22_s10 = sshll.u32 %s2270_s9, 4  ;;  %s46_s12 = sshll.u32 %s2271_s11, 4  ;;  %s23_s10 = int_to_ptr.vmem [resolvable:$true] %s22_s10  ;;  %s2356_s12 = int_to_ptr.vmem [resolvable:$true] %s46_s12 }
  0x26   :  { %s2170_s15 = scalar_lea.hbm %s2671_s0, 2048 }
  0x27   :  { %p2171_p2 = scmp.ne.s32.totalorder %s2671_s0, %s2170_s15  ;;  %p2174_p3 = scmp.lt.u32.totalorder %s2170_s15, %s2671_s0 }
  0x29   :  { %p2176_p4 = pnand %p2174_p3, %p2171_p2 }
  0x2b   :  { %2179 = shalt.err (!%p2176_p4)
}
  0x2c   :  { %s2180_s3 = scalar_lea.vmem %s23_s10, 2048  ;;  %p2185_p6 = scmp.lt.s32.totalorder %s23_s10, %s23_s10 }
  0x2d   :  { %p2181_p5 = scmp.ne.s32.totalorder %s23_s10, %s2180_s3  ;;  %p2186_p7 = scmp.lt.s32.totalorder %s2180_s3, %s2180_s3 }
  0x2f   :  { %p2187_p8 = por %p2186_p7, %p2185_p6 }
  0x31   :  { %p2188_p9 = pnand %p2187_p8, %p2181_p5 }
  0x33   :  { %2191 = shalt.err (!%p2188_p9)
}
  0x34   :  { %28 = dma.hbm_to_vmem [thread:$0]  %s2671_s0, 2048, %s23_s10, [#allocation3], %s2268_s17, %s2268_s17, %s2269_s18  }
  0x35   :  { %s2192_s25 = scalar_lea.hbm %s2673_s2, 2048 }
  0x36   :  { %p2193_p10 = scmp.ne.s32.totalorder %s2673_s2, %s2192_s25  ;;  %p2196_p11 = scmp.lt.u32.totalorder %s2192_s25, %s2673_s2 }
  0x38   :  { %p2198_p12 = pnand %p2196_p11, %p2193_p10 }
  0x3a   :  { %2201 = shalt.err (!%p2198_p12)
}
  0x3b   :  { %s2202_s28 = scalar_lea.vmem %s2356_s12, 2048  ;;  %p2207_p0 = scmp.lt.s32.totalorder %s2356_s12, %s2356_s12 }
  0x3c   :  { %p2203_p13 = scmp.ne.s32.totalorder %s2356_s12, %s2202_s28  ;;  %p2208_p1 = scmp.lt.s32.totalorder %s2202_s28, %s2202_s28 }
  0x3e   :  { %p2209_p2 = por %p2208_p1, %p2207_p0 }
  0x40   :  { %p2210_p3 = pnand %p2209_p2, %p2203_p13 }
  0x42   :  { %2213 = shalt.err (!%p2210_p3)
}
  0x43   :  { %52 = dma.hbm_to_vmem [thread:$0]  %s2673_s2, 2048, %s2356_s12, [#allocation6], %s2268_s17, %s2268_s17, %s2269_s18  }
  0x44   :  { %s2272_s10 = smov [#allocation10]   ;;  %s2214_s15 = scalar_lea.hbm %s2675_s4, 2048 }
  0x45   :  { %s70_s11 = sshll.u32 %s2272_s10, 4  ;;  %p2215_p4 = scmp.ne.s32.totalorder %s2675_s4, %s2214_s15  ;;  %s71_s11 = int_to_ptr.vmem [resolvable:$true] %s70_s11 }
  0x46   :  { %p2218_p5 = scmp.lt.u32.totalorder %s2214_s15, %s2675_s4 }
  0x48   :  { %p2220_p6 = pnand %p2218_p5, %p2215_p4 }
  0x4a   :  { %2223 = shalt.err (!%p2220_p6)
}
  0x4b   :  { %s2224_s3 = scalar_lea.vmem %s71_s11, 2048  ;;  %p2229_p8 = scmp.lt.s32.totalorder %s71_s11, %s71_s11 }
  0x4c   :  { %p2225_p7 = scmp.ne.s32.totalorder %s71_s11, %s2224_s3  ;;  %p2230_p9 = scmp.lt.s32.totalorder %s2224_s3, %s2224_s3 }
  0x4e   :  { %p2231_p10 = por %p2230_p9, %p2229_p8 }
  0x50   :  { %p2232_p11 = pnand %p2231_p10, %p2225_p7 }
  0x52   :  { %2235 = shalt.err (!%p2232_p11)
}
  0x53   :  { %76 = dma.hbm_to_vmem [thread:$0]  %s2675_s4, 2048, %s71_s11, [#allocation9], %s2268_s17, %s2268_s17, %s2269_s18  }
  0x54   :  { %2258 = dma.done.wait [#allocation3], 2048  }
  0x55   :  { %2259 = vsyncadd [#allocation3], 4294965248 }
  0x56   :  { %2260 = dma.done.wait [#allocation6], 4096  }
  0x57   :  { %2261 = vsyncadd [#allocation6], 4294963200 }
  0x58   :  { %2262 = dma.done.wait [#allocation9], 4096  }
  0x59   :  { %2263 = vsyncadd [#allocation9], 4294963200  ;;  %v130_v0 = vld [vmem:[#allocation7] sm:$0xff]  ;;  %v131_v1 = vld [vmem:[#allocation7 + $0x8] sm:$0xff] }
  0x5a   :  { %v132_v2 = vld [vmem:[#allocation7 + $0x10] sm:$0xff]  ;;  %v1862_v3 = vpack.c.bf16 %v131_v1, %v130_v0  ;;  %v133_v4 = vld [vmem:[#allocation7 + $0x18] sm:$0xff]  ;;  %v134_v6 = vld [vmem:[#allocation7 + $0x20] sm:$0xff] }
  0x5b   :  { %v1866_v5 = vpack.c.bf16 %v133_v4, %v132_v2  ;;  %v135_v7 = vld [vmem:[#allocation7 + $0x28] sm:$0xff]  ;;  %v114_v9 = vld [vmem:[#allocation5] sm:$0xff]  ;;  %v136_v10 = vld [vmem:[#allocation7 + $0x30] sm:$0xff] }
  0x5c   :  { %1863 = vmatprep.subr.bf16.mxu0 %v1862_v3  ;;  %v1870_v8 = vpack.c.bf16 %v135_v7, %v134_v6  ;;  %v137_v11 = vld [vmem:[#allocation7 + $0x38] sm:$0xff]  ;;  %1558 = vmatprep.mubr.f32.mxu0 %v114_v9  ;;  %v138_v13 = vld [vmem:[#allocation7 + $0x40] sm:$0xff]  ;;  %v139_v14 = vld [vmem:[#allocation7 + $0x48] sm:$0xff] }
  0x5d   :  { %1865 = vmatpush3.bf16.msra.mxu0 %v1862_v3  ;;  %v1874_v12 = vpack.c.bf16 %v137_v11, %v136_v10  ;;  %v1878_v15 = vpack.c.bf16 %v139_v14, %v138_v13  ;;  %v140_v16 = vld [vmem:[#allocation7 + $0x50] sm:$0xff]  ;;  %v141_v17 = vld [vmem:[#allocation7 + $0x58] sm:$0xff]  ;;  %v142_v19 = vld [vmem:[#allocation7 + $0x60] sm:$0xff] }
  0x5e   :  { %1867 = vmatprep.subr.bf16.mxu0 %v1866_v5  ;;  %v1882_v18 = vpack.c.bf16 %v141_v17, %v140_v16  ;;  %v143_v20 = vld [vmem:[#allocation7 + $0x68] sm:$0xff]  ;;  %v144_v22 = vld [vmem:[#allocation7 + $0x70] sm:$0xff]  ;;  %v145_v23 = vld [vmem:[#allocation7 + $0x78] sm:$0xff] }
  0x5f   :  { %v1886_v21 = vpack.c.bf16 %v143_v20, %v142_v19  ;;  %v1890_v24 = vpack.c.bf16 %v145_v23, %v144_v22  ;;  %v115_v25 = vld [vmem:[#allocation5 + $0x8] sm:$0xff]  ;;  %v116_v26 = vld [vmem:[#allocation5 + $0x10] sm:$0xff]  ;;  %v117_v27 = vld [vmem:[#allocation5 + $0x18] sm:$0xff] }
  0x60   :  { %v118_v28 = vld [vmem:[#allocation5 + $0x20] sm:$0xff]  ;;  %v119_v29 = vld [vmem:[#allocation5 + $0x28] sm:$0xff]  ;;  %v120_v30 = vld [vmem:[#allocation5 + $0x30] sm:$0xff] }
  0x61   :  { %1869 = vmatpush3.bf16.msra.mxu0 %v1866_v5  ;;  %v121_v31 = vld [vmem:[#allocation5 + $0x38] sm:$0xff]  ;;  %v122_v32 = vld [vmem:[#allocation5 + $0x40] sm:$0xff]  ;;  %v123_v33 = vld [vmem:[#allocation5 + $0x48] sm:$0xff] }
  0x62   :  { %1871 = vmatprep.subr.bf16.mxu0 %v1870_v8  ;;  %v124_v34 = vld [vmem:[#allocation5 + $0x50] sm:$0xff]  ;;  %v125_v35 = vld [vmem:[#allocation5 + $0x58] sm:$0xff]  ;;  %v126_v36 = vld [vmem:[#allocation5 + $0x60] sm:$0xff] }
  0x63   :  { %v127_v37 = vld [vmem:[#allocation5 + $0x68] sm:$0xff]  ;;  %v128_v38 = vld [vmem:[#allocation5 + $0x70] sm:$0xff]  ;;  %v129_v39 = vld [vmem:[#allocation5 + $0x78] sm:$0xff] }
  0x64   :  { %v2408_v40 = vld [vmem:[#allocation2] sm:$0xff]  ;;  %v460_v42 = vld [vmem:[#allocation8 + $0x8] sm:$0xff]  ;;  %v461_v43 = vld [vmem:[#allocation8 + $0x10] sm:$0xff] }
  0x65   :  { %1873 = vmatpush3.bf16.msra.mxu0 %v1870_v8  ;;  %1614 = vmatprep.mubr.f32.mxu1 %v2408_v40  ;;  %v459_v41 = vld [vmem:[#allocation8] sm:$0xff]  ;;  %v462_v45 = vld [vmem:[#allocation8 + $0x18] sm:$0xff]  ;;  %v464_v48 = vld [vmem:[#allocation8 + $0x28] sm:$0xff] }
  0x66   :  { %1875 = vmatprep.subr.bf16.mxu0 %v1874_v12  ;;  %v1926_v44 = vpack.c.bf16 %v460_v42, %v459_v41  ;;  %v1930_v46 = vpack.c.bf16 %v462_v45, %v461_v43  ;;  %v463_v47 = vld [vmem:[#allocation8 + $0x20] sm:$0xff]  ;;  %v465_v50 = vld [vmem:[#allocation8 + $0x30] sm:$0xff]  ;;  %v466_v51 = vld [vmem:[#allocation8 + $0x38] sm:$0xff] }
  0x67   :  { %v1934_v49 = vpack.c.bf16 %v464_v48, %v463_v47  ;;  %v1938_v52 = vpack.c.bf16 %v466_v51, %v465_v50  ;;  %v467_v53 = vld [vmem:[#allocation8 + $0x40] sm:$0xff]  ;;  %v468_v54 = vld [vmem:[#allocation8 + $0x48] sm:$0xff]  ;;  %v469_v56 = vld [vmem:[#allocation8 + $0x50] sm:$0xff] }
  0x68   :  { %v1942_v55 = vpack.c.bf16 %v468_v54, %v467_v53  ;;  %v470_v57 = vld [vmem:[#allocation8 + $0x58] sm:$0xff]  ;;  %v471_v59 = vld [vmem:[#allocation8 + $0x60] sm:$0xff]  ;;  %v472_v60 = vld [vmem:[#allocation8 + $0x68] sm:$0xff] }
  0x69   :  { %1877 = vmatpush3.bf16.msra.mxu0 %v1874_v12  ;;  %v1946_v58 = vpack.c.bf16 %v470_v57, %v469_v56  ;;  %v1950_v61 = vpack.c.bf16 %v472_v60, %v471_v59  ;;  %v2411_v22 = vld [vmem:[#allocation2 + $0x8] sm:$0xff]  ;;  %v2413_v23 = vld [vmem:[#allocation2 + $0x10] sm:$0xff]  ;;  %v1331_v41 = vld [vmem:[%s2676_s5] ss:$0 sm:$0xff] }
  0x6a   :  { %1879 = vmatprep.subr.bf16.mxu0 %v1878_v15 }
  0x6d   :  { %1881 = vmatpush3.bf16.msra.mxu0 %v1878_v15 }
  0x6e   :  { %1883 = vmatprep.subr.bf16.mxu0 %v1882_v18 }
  0x71   :  { %1885 = vmatpush3.bf16.msra.mxu0 %v1882_v18 }
  0x72   :  { %1887 = vmatprep.subr.bf16.mxu0 %v1886_v21 }
  0x75   :  { %1889 = vmatpush3.bf16.msra.mxu0 %v1886_v21 }
  0x76   :  { %1891 = vmatprep.subr.bf16.mxu0 %v1890_v24 }
  0x79   :  { %1893 = vmatpush3.bf16.msra.mxu0 %v1890_v24  ;;  %v2417_v24 = vld [vmem:[#allocation2 + $0x18] sm:$0xff] }
  0x7a   :  { %1927 = vmatprep.subr.bf16.mxu0 %v1926_v44 }
  0x7c   :  { %1559 = vmatmul.mubr.f32.vlgmr.msra.gmra.mrb[0].mxu0 %v115_v25  ;;  %v2419_v25 = vld [vmem:[#allocation2 + $0x20] sm:$0xff] }
  0x7d   :  { %1561 = vmatprep.mubr.f32.mxu0 %v116_v26  ;;  %1929 = vmatpush3.bf16.msra.mxu0 %v1926_v44  ;;  %v2423_v26 = vld [vmem:[#allocation2 + $0x28] sm:$0xff] }
  0x7e   :  { %1931 = vmatprep.subr.bf16.mxu0 %v1930_v46 }
  0x80   :  { %1562 = vmatmul.mubr.f32.gmra.mrb[2].mxu0 %v117_v27  ;;  %v2425_v27 = vld [vmem:[#allocation2 + $0x30] sm:$0xff] }
  0x81   :  { %1564 = vmatprep.mubr.f32.mxu0 %v118_v28  ;;  %1933 = vmatpush3.bf16.msra.mxu0 %v1930_v46  ;;  %v2429_v28 = vld [vmem:[#allocation2 + $0x38] sm:$0xff] }
  0x82   :  { %1935 = vmatprep.subr.bf16.mxu0 %v1934_v49 }
  0x84   :  { %1565 = vmatmul.mubr.f32.gmra.mrb[4].mxu0 %v119_v29  ;;  %v2431_v29 = vld [vmem:[#allocation2 + $0x40] sm:$0xff] }
  0x85   :  { %1567 = vmatprep.mubr.f32.mxu0 %v120_v30  ;;  %1937 = vmatpush3.bf16.msra.mxu0 %v1934_v49  ;;  %v2435_v30 = vld [vmem:[#allocation2 + $0x48] sm:$0xff] }
  0x86   :  { %1939 = vmatprep.subr.bf16.mxu0 %v1938_v52 }
  0x88   :  { %1568 = vmatmul.mubr.f32.gmra.mrb[6].mxu0 %v121_v31  ;;  %v2437_v31 = vld [vmem:[#allocation2 + $0x50] sm:$0xff] }
  0x89   :  { %1570 = vmatprep.mubr.f32.mxu0 %v122_v32  ;;  %1941 = vmatpush3.bf16.msra.mxu0 %v1938_v52  ;;  %v2441_v32 = vld [vmem:[#allocation2 + $0x58] sm:$0xff] }
  0x8a   :  { %1943 = vmatprep.subr.bf16.mxu0 %v1942_v55 }
  0x8c   :  { %1571 = vmatmul.mubr.f32.gmra.mrb[8].mxu0 %v123_v33  ;;  %v2443_v33 = vld [vmem:[#allocation2 + $0x60] sm:$0xff] }
  0x8d   :  { %1573 = vmatprep.mubr.f32.mxu0 %v124_v34  ;;  %1945 = vmatpush3.bf16.msra.mxu0 %v1942_v55  ;;  %v2447_v34 = vld [vmem:[#allocation2 + $0x68] sm:$0xff] }
  0x8e   :  { %1947 = vmatprep.subr.bf16.mxu0 %v1946_v58 }
  0x90   :  { %1574 = vmatmul.mubr.f32.gmra.mrb[10].mxu0 %v125_v35  ;;  %v2449_v35 = vld [vmem:[#allocation2 + $0x70] sm:$0xff] }
  0x91   :  { %1576 = vmatprep.mubr.f32.mxu0 %v126_v36  ;;  %1949 = vmatpush3.bf16.msra.mxu0 %v1946_v58  ;;  %v2453_v36 = vld [vmem:[#allocation2 + $0x78] sm:$0xff] }
  0x92   :  { %1951 = vmatprep.subr.bf16.mxu0 %v1950_v61 }
  0x94   :  { %1577 = vmatmul.mubr.f32.gmra.mrb[12].mxu0 %v127_v37  ;;  %v473_v37 = vld [vmem:[#allocation8 + $0x70] sm:$0xff] }
  0x95   :  { %1579 = vmatprep.mubr.f32.mxu0 %v128_v38  ;;  %1953 = vmatpush3.bf16.msra.mxu0 %v1950_v61  ;;  %v474_v38 = vld [vmem:[#allocation8 + $0x78] sm:$0xff] }
  0x98   :  { %1580 = vmatmul.mubr.f32.gmra.mrb[14].mxu0 %v129_v39  ;;  %v1954_v39 = vpack.c.bf16 %v474_v38, %v473_v37 }
  0x9a   :  { %1955 = vmatprep.subr.bf16.mxu0 %v1954_v39 }
  0x9b   :  { %1957 = vmatpush3.bf16.msra.mxu0 %v1954_v39 }
 0x14f   :  { %v1560_v62 = vpop.f32.mrb[0].mxu0 }
 0x150   :  { %v213_v63 = vpop.f32.mrb[1].mxu0 }
 0x151   :  { %v1894_v0 = vpack.c.bf16 %v1560_v62, %v213_v63 }
 0x153   :  { %v1563_v1 = vpop.f32.mrb[2].mxu0  ;;  %1895 = vmatprep.subr.bf16.mxu1 %v1894_v0 }
 0x154   :  { %v223_v2 = vpop.f32.mrb[3].mxu0  ;;  %1897 = vmatpush3.bf16.msra.mxu1 %v1894_v0 }
 0x155   :  { %v1898_v3 = vpack.c.bf16 %v1563_v1, %v223_v2 }
 0x157   :  { %v1566_v4 = vpop.f32.mrb[4].mxu0  ;;  %1899 = vmatprep.subr.bf16.mxu1 %v1898_v3 }
 0x158   :  { %v233_v5 = vpop.f32.mrb[5].mxu0  ;;  %1901 = vmatpush3.bf16.msra.mxu1 %v1898_v3 }
 0x159   :  { %v1902_v6 = vpack.c.bf16 %v1566_v4, %v233_v5 }
 0x15b   :  { %v1569_v7 = vpop.f32.mrb[6].mxu0  ;;  %1903 = vmatprep.subr.bf16.mxu1 %v1902_v6 }
 0x15c   :  { %v243_v8 = vpop.f32.mrb[7].mxu0  ;;  %1905 = vmatpush3.bf16.msra.mxu1 %v1902_v6 }
 0x15d   :  { %v1906_v9 = vpack.c.bf16 %v1569_v7, %v243_v8 }
 0x15f   :  { %v1572_v10 = vpop.f32.mrb[8].mxu0  ;;  %1907 = vmatprep.subr.bf16.mxu1 %v1906_v9 }
 0x160   :  { %v253_v11 = vpop.f32.mrb[9].mxu0  ;;  %1909 = vmatpush3.bf16.msra.mxu1 %v1906_v9 }
 0x161   :  { %v1910_v12 = vpack.c.bf16 %v1572_v10, %v253_v11 }
 0x163   :  { %v1575_v13 = vpop.f32.mrb[10].mxu0  ;;  %1911 = vmatprep.subr.bf16.mxu1 %v1910_v12 }
 0x164   :  { %v263_v14 = vpop.f32.mrb[11].mxu0  ;;  %1913 = vmatpush3.bf16.msra.mxu1 %v1910_v12 }
 0x165   :  { %v1914_v15 = vpack.c.bf16 %v1575_v13, %v263_v14 }
 0x167   :  { %v1578_v16 = vpop.f32.mrb[12].mxu0  ;;  %1915 = vmatprep.subr.bf16.mxu1 %v1914_v15 }
 0x168   :  { %v273_v17 = vpop.f32.mrb[13].mxu0  ;;  %1917 = vmatpush3.bf16.msra.mxu1 %v1914_v15 }
 0x169   :  { %v1918_v18 = vpack.c.bf16 %v1578_v16, %v273_v17 }
 0x16b   :  { %v1581_v19 = vpop.f32.mrb[14].mxu0  ;;  %1919 = vmatprep.subr.bf16.mxu1 %v1918_v18 }
 0x16c   :  { %v283_v20 = vpop.f32.mrb[15].mxu0  ;;  %1921 = vmatpush3.bf16.msra.mxu1 %v1918_v18 }
 0x16d   :  { %v1922_v21 = vpack.c.bf16 %v1581_v19, %v283_v20 }
 0x16f   :  { %1923 = vmatprep.subr.bf16.mxu1 %v1922_v21 }
 0x170   :  { %1925 = vmatpush3.bf16.msra.mxu1 %v1922_v21 }
 0x173   :  { %1615 = vmatmul.mubr.f32.vlgmr.msra.gmra.mrb[0].mxu1 %v2411_v22 }
 0x174   :  { %1617 = vmatprep.mubr.f32.mxu1 %v2413_v23 }
 0x177   :  { %1618 = vmatmul.mubr.f32.gmra.mrb[2].mxu1 %v2417_v24 }
 0x178   :  { %1620 = vmatprep.mubr.f32.mxu1 %v2419_v25 }
 0x17b   :  { %1621 = vmatmul.mubr.f32.gmra.mrb[4].mxu1 %v2423_v26 }
 0x17c   :  { %1623 = vmatprep.mubr.f32.mxu1 %v2425_v27 }
 0x17f   :  { %1624 = vmatmul.mubr.f32.gmra.mrb[6].mxu1 %v2429_v28 }
 0x180   :  { %1626 = vmatprep.mubr.f32.mxu1 %v2431_v29 }
 0x183   :  { %1627 = vmatmul.mubr.f32.gmra.mrb[8].mxu1 %v2435_v30 }
 0x184   :  { %1629 = vmatprep.mubr.f32.mxu1 %v2437_v31 }
 0x187   :  { %1630 = vmatmul.mubr.f32.gmra.mrb[10].mxu1 %v2441_v32 }
 0x188   :  { %1632 = vmatprep.mubr.f32.mxu1 %v2443_v33 }
 0x18b   :  { %1633 = vmatmul.mubr.f32.gmra.mrb[12].mxu1 %v2447_v34 }
 0x18c   :  { %1635 = vmatprep.mubr.f32.mxu1 %v2449_v35 }
 0x18f   :  { %1636 = vmatmul.mubr.f32.gmra.mrb[14].mxu1 %v2453_v36 }
 0x190   :  { %1726 = vmatprep.mubr.f32.mxu1 %v2408_v40 }
 0x246   :  { %v1616_v42 = vpop.f32.mrb[0].mxu1 }
 0x247   :  { %v370_v43 = vadd.f32 %v1616_v42, %v1331_v41  ;;  %v364_v44 = vpop.f32.mrb[1].mxu1 }
 0x248   :  { %v365_v45 = vadd.f32 %v1331_v41, %v364_v44  ;;  %v789_v44 = vld [vmem:[#allocation10 + $0x8] sm:$0xff] }
 0x249   :  { %v444_v48 = vmax.f32 %v370_v43, 0.0  ;;  %v788_v43 = vld [vmem:[#allocation10] sm:$0xff] }
 0x24a   :  { %v443_v46 = vmax.f32 %v365_v45, 0.0  ;;  %v1619_v47 = vpop.f32.mrb[2].mxu1  ;;  %v790_v45 = vld [vmem:[#allocation10 + $0x10] sm:$0xff] }
 0x24b   :  { %v380_v49 = vadd.f32 %v1619_v47, %v1331_v41  ;;  %v374_v50 = vpop.f32.mrb[3].mxu1  ;;  %v791_v47 = vld [vmem:[#allocation10 + $0x18] sm:$0xff] }
 0x24c   :  { %v375_v51 = vadd.f32 %v1331_v41, %v374_v50  ;;  %1670 = vmatprep.mubr.f32.mxu0 %v443_v46  ;;  %v1990_v46 = vpack.c.bf16 %v789_v44, %v788_v43  ;;  %v793_v50 = vld [vmem:[#allocation10 + $0x28] sm:$0xff]  ;;  %v1332_v43 = vld [vmem:[%s2677_s6] ss:$0 sm:$0xff] }
 0x24d   :  { %1671 = vmatmul.mubr.f32.vlgmr.msra.gmra.mrb[16].mxu0 %v444_v48  ;;  %v446_v54 = vmax.f32 %v380_v49, 0.0  ;;  %v1994_v48 = vpack.c.bf16 %v791_v47, %v790_v45  ;;  %v792_v49 = vld [vmem:[#allocation10 + $0x20] sm:$0xff] }
 0x24e   :  { %v445_v52 = vmax.f32 %v375_v51, 0.0  ;;  %v1622_v53 = vpop.f32.mrb[4].mxu1  ;;  %1991 = vmatprep.subr.bf16.mxu0 %v1990_v46  ;;  %v1998_v51 = vpack.c.bf16 %v793_v50, %v792_v49 }
 0x24f   :  { %v390_v55 = vadd.f32 %v1622_v53, %v1331_v41  ;;  %v384_v56 = vpop.f32.mrb[5].mxu1  ;;  %1993 = vmatpush3.bf16.msra.mxu0 %v1990_v46 }
 0x250   :  { %v385_v57 = vadd.f32 %v1331_v41, %v384_v56  ;;  %1673 = vmatprep.mubr.f32.mxu0 %v445_v52  ;;  %1995 = vmatprep.subr.bf16.mxu0 %v1994_v48  ;;  %v794_v52 = vld [vmem:[#allocation10 + $0x30] sm:$0xff] }
 0x251   :  { %1674 = vmatmul.mubr.f32.gmra.mrb[18].mxu0 %v446_v54  ;;  %v448_v60 = vmax.f32 %v390_v55, 0.0  ;;  %v796_v54 = vld [vmem:[#allocation10 + $0x40] sm:$0xff]  ;;  %v797_v55 = vld [vmem:[#allocation10 + $0x48] sm:$0xff] }
 0x252   :  { %v447_v58 = vmax.f32 %v385_v57, 0.0  ;;  %v1625_v59 = vpop.f32.mrb[6].mxu1  ;;  %v2006_v56 = vpack.c.bf16 %v797_v55, %v796_v54  ;;  %v798_v57 = vld [vmem:[#allocation10 + $0x50] sm:$0xff] }
 0x253   :  { %v400_v61 = vadd.f32 %v1625_v59, %v1331_v41  ;;  %v394_v62 = vpop.f32.mrb[7].mxu1  ;;  %1997 = vmatpush3.bf16.msra.mxu0 %v1994_v48 }
 0x254   :  { %v395_v63 = vadd.f32 %v1331_v41, %v394_v62  ;;  %1676 = vmatprep.mubr.f32.mxu0 %v447_v58  ;;  %1999 = vmatprep.subr.bf16.mxu0 %v1998_v51  ;;  %v799_v58 = vld [vmem:[#allocation10 + $0x58] sm:$0xff] }
 0x255   :  { %1677 = vmatmul.mubr.f32.gmra.mrb[20].mxu0 %v448_v60  ;;  %v450_v2 = vmax.f32 %v400_v61, 0.0  ;;  %v2010_v59 = vpack.c.bf16 %v799_v58, %v798_v57  ;;  %v800_v60 = vld [vmem:[#allocation10 + $0x60] sm:$0xff]  ;;  %v801_v61 = vld [vmem:[#allocation10 + $0x68] sm:$0xff] }
 0x256   :  { %v449_v0 = vmax.f32 %v395_v63, 0.0  ;;  %v1628_v1 = vpop.f32.mrb[8].mxu1  ;;  %v2014_v62 = vpack.c.bf16 %v801_v61, %v800_v60 }
 0x257   :  { %v410_v3 = vadd.f32 %v1628_v1, %v1331_v41  ;;  %v404_v4 = vpop.f32.mrb[9].mxu1  ;;  %2001 = vmatpush3.bf16.msra.mxu0 %v1998_v51 }
 0x258   :  { %v405_v5 = vadd.f32 %v1331_v41, %v404_v4  ;;  %1679 = vmatprep.mubr.f32.mxu0 %v449_v0 }
 0x259   :  { %1680 = vmatmul.mubr.f32.gmra.mrb[22].mxu0 %v450_v2  ;;  %v452_v8 = vmax.f32 %v410_v3, 0.0 }
 0x25a   :  { %v451_v6 = vmax.f32 %v405_v5, 0.0  ;;  %v1631_v7 = vpop.f32.mrb[10].mxu1 }
 0x25b   :  { %v420_v9 = vadd.f32 %v1631_v7, %v1331_v41  ;;  %v414_v10 = vpop.f32.mrb[11].mxu1 }
 0x25c   :  { %v415_v11 = vadd.f32 %v1331_v41, %v414_v10  ;;  %1682 = vmatprep.mubr.f32.mxu0 %v451_v6 }
 0x25d   :  { %1683 = vmatmul.mubr.f32.gmra.mrb[24].mxu0 %v452_v8  ;;  %v454_v14 = vmax.f32 %v420_v9, 0.0 }
 0x25e   :  { %v453_v12 = vmax.f32 %v415_v11, 0.0  ;;  %v1634_v13 = vpop.f32.mrb[12].mxu1 }
 0x25f   :  { %v430_v15 = vadd.f32 %v1634_v13, %v1331_v41  ;;  %v424_v16 = vpop.f32.mrb[13].mxu1 }
 0x260   :  { %v425_v17 = vadd.f32 %v1331_v41, %v424_v16  ;;  %1685 = vmatprep.mubr.f32.mxu0 %v453_v12 }
 0x261   :  { %1686 = vmatmul.mubr.f32.gmra.mrb[26].mxu0 %v454_v14  ;;  %v456_v20 = vmax.f32 %v430_v15, 0.0 }
 0x262   :  { %v455_v18 = vmax.f32 %v425_v17, 0.0  ;;  %v1637_v19 = vpop.f32.mrb[14].mxu1 }
 0x263   :  { %v440_v21 = vadd.f32 %v1637_v19, %v1331_v41  ;;  %v434_v37 = vpop.f32.mrb[15].mxu1 }
 0x264   :  { %v435_v38 = vadd.f32 %v1331_v41, %v434_v37  ;;  %1688 = vmatprep.mubr.f32.mxu0 %v455_v18  ;;  %v795_v41 = vld [vmem:[#allocation10 + $0x38] sm:$0xff] }
 0x265   :  { %1689 = vmatmul.mubr.f32.gmra.mrb[28].mxu0 %v456_v20  ;;  %v458_v42 = vmax.f32 %v440_v21, 0.0  ;;  %v2002_v53 = vpack.c.bf16 %v795_v41, %v794_v52 }
 0x266   :  { %v457_v39 = vmax.f32 %v435_v38, 0.0  ;;  %v802_v38 = vld [vmem:[#allocation10 + $0x70] sm:$0xff] }
 0x267   :  { %2003 = vmatprep.subr.bf16.mxu0 %v2002_v53 }
 0x268   :  { %1691 = vmatprep.mubr.f32.mxu0 %v457_v39  ;;  %2005 = vmatpush3.bf16.msra.mxu0 %v2002_v53  ;;  %v803_v39 = vld [vmem:[#allocation10 + $0x78] sm:$0xff] }
 0x269   :  { %1692 = vmatmul.mubr.f32.gmra.mrb[30].mxu0 %v458_v42  ;;  %2007 = vmatprep.subr.bf16.mxu0 %v2006_v56  ;;  %v2018_v42 = vpack.c.bf16 %v803_v39, %v802_v38 }
 0x26c   :  { %2009 = vmatpush3.bf16.msra.mxu0 %v2006_v56 }
 0x26d   :  { %2011 = vmatprep.subr.bf16.mxu0 %v2010_v59 }
 0x270   :  { %2013 = vmatpush3.bf16.msra.mxu0 %v2010_v59 }
 0x271   :  { %2015 = vmatprep.subr.bf16.mxu0 %v2014_v62 }
 0x274   :  { %2017 = vmatpush3.bf16.msra.mxu0 %v2014_v62 }
 0x275   :  { %2019 = vmatprep.subr.bf16.mxu0 %v2018_v42 }
 0x278   :  { %2021 = vmatpush3.bf16.msra.mxu0 %v2018_v42 }
 0x320   :  { %v1672_v63 = vpop.f32.mrb[16].mxu0 }
 0x321   :  { %v542_v0 = vpop.f32.mrb[17].mxu0 }
 0x322   :  { %v1958_v1 = vpack.c.bf16 %v1672_v63, %v542_v0 }
 0x324   :  { %v1675_v2 = vpop.f32.mrb[18].mxu0  ;;  %1959 = vmatprep.subr.bf16.mxu1 %v1958_v1 }
 0x325   :  { %v552_v3 = vpop.f32.mrb[19].mxu0  ;;  %1961 = vmatpush3.bf16.msra.mxu1 %v1958_v1 }
 0x326   :  { %v1962_v4 = vpack.c.bf16 %v1675_v2, %v552_v3 }
 0x328   :  { %v1678_v5 = vpop.f32.mrb[20].mxu0  ;;  %1963 = vmatprep.subr.bf16.mxu1 %v1962_v4 }
 0x329   :  { %v562_v6 = vpop.f32.mrb[21].mxu0  ;;  %1965 = vmatpush3.bf16.msra.mxu1 %v1962_v4 }
 0x32a   :  { %v1966_v7 = vpack.c.bf16 %v1678_v5, %v562_v6 }
 0x32c   :  { %v1681_v8 = vpop.f32.mrb[22].mxu0  ;;  %1967 = vmatprep.subr.bf16.mxu1 %v1966_v7 }
 0x32d   :  { %v572_v9 = vpop.f32.mrb[23].mxu0  ;;  %1969 = vmatpush3.bf16.msra.mxu1 %v1966_v7 }
 0x32e   :  { %v1970_v10 = vpack.c.bf16 %v1681_v8, %v572_v9 }
 0x330   :  { %v1684_v11 = vpop.f32.mrb[24].mxu0  ;;  %1971 = vmatprep.subr.bf16.mxu1 %v1970_v10 }
 0x331   :  { %v582_v12 = vpop.f32.mrb[25].mxu0  ;;  %1973 = vmatpush3.bf16.msra.mxu1 %v1970_v10 }
 0x332   :  { %v1974_v13 = vpack.c.bf16 %v1684_v11, %v582_v12 }
 0x334   :  { %v1687_v14 = vpop.f32.mrb[26].mxu0  ;;  %1975 = vmatprep.subr.bf16.mxu1 %v1974_v13 }
 0x335   :  { %v592_v15 = vpop.f32.mrb[27].mxu0  ;;  %1977 = vmatpush3.bf16.msra.mxu1 %v1974_v13 }
 0x336   :  { %v1978_v16 = vpack.c.bf16 %v1687_v14, %v592_v15 }
 0x338   :  { %v1690_v17 = vpop.f32.mrb[28].mxu0  ;;  %1979 = vmatprep.subr.bf16.mxu1 %v1978_v16 }
 0x339   :  { %v602_v18 = vpop.f32.mrb[29].mxu0  ;;  %1981 = vmatpush3.bf16.msra.mxu1 %v1978_v16 }
 0x33a   :  { %v1982_v19 = vpack.c.bf16 %v1690_v17, %v602_v18 }
 0x33c   :  { %v1693_v20 = vpop.f32.mrb[30].mxu0  ;;  %1983 = vmatprep.subr.bf16.mxu1 %v1982_v19 }
 0x33d   :  { %v612_v21 = vpop.f32.mrb[31].mxu0  ;;  %1985 = vmatpush3.bf16.msra.mxu1 %v1982_v19 }
 0x33e   :  { %v1986_v37 = vpack.c.bf16 %v1693_v20, %v612_v21 }
 0x340   :  { %1987 = vmatprep.subr.bf16.mxu1 %v1986_v37 }
 0x341   :  { %1989 = vmatpush3.bf16.msra.mxu1 %v1986_v37 }
 0x344   :  { %1727 = vmatmul.mubr.f32.vlgmr.msra.gmra.mrb[16].mxu1 %v2411_v22 }
 0x345   :  { %1729 = vmatprep.mubr.f32.mxu1 %v2413_v23 }
 0x348   :  { %1730 = vmatmul.mubr.f32.gmra.mrb[18].mxu1 %v2417_v24 }
 0x349   :  { %1732 = vmatprep.mubr.f32.mxu1 %v2419_v25 }
 0x34c   :  { %1733 = vmatmul.mubr.f32.gmra.mrb[20].mxu1 %v2423_v26 }
 0x34d   :  { %1735 = vmatprep.mubr.f32.mxu1 %v2425_v27 }
 0x350   :  { %1736 = vmatmul.mubr.f32.gmra.mrb[22].mxu1 %v2429_v28 }
 0x351   :  { %1738 = vmatprep.mubr.f32.mxu1 %v2431_v29 }
 0x354   :  { %1739 = vmatmul.mubr.f32.gmra.mrb[24].mxu1 %v2435_v30 }
 0x355   :  { %1741 = vmatprep.mubr.f32.mxu1 %v2437_v31 }
 0x358   :  { %1742 = vmatmul.mubr.f32.gmra.mrb[26].mxu1 %v2441_v32 }
 0x359   :  { %1744 = vmatprep.mubr.f32.mxu1 %v2443_v33 }
 0x35c   :  { %1745 = vmatmul.mubr.f32.gmra.mrb[28].mxu1 %v2447_v34 }
 0x35d   :  { %1747 = vmatprep.mubr.f32.mxu1 %v2449_v35 }
 0x360   :  { %1748 = vmatmul.mubr.f32.gmra.mrb[30].mxu1 %v2453_v36 }
 0x361   :  { %1838 = vmatprep.mubr.f32.mxu1 %v2408_v40 }
 0x417   :  { %v1728_v44 = vpop.f32.mrb[16].mxu1 }
 0x418   :  { %v699_v45 = vadd.f32 %v1728_v44, %v1332_v43  ;;  %v693_v46 = vpop.f32.mrb[17].mxu1 }
 0x419   :  { %v694_v47 = vadd.f32 %v1332_v43, %v693_v46 }
 0x41a   :  { %v773_v50 = vmax.f32 %v699_v45, 0.0 }
 0x41b   :  { %v772_v48 = vmax.f32 %v694_v47, 0.0  ;;  %v1731_v49 = vpop.f32.mrb[18].mxu1 }
 0x41c   :  { %v709_v51 = vadd.f32 %v1731_v49, %v1332_v43  ;;  %v703_v52 = vpop.f32.mrb[19].mxu1 }
 0x41d   :  { %v704_v41 = vadd.f32 %v1332_v43, %v703_v52  ;;  %1782 = vmatprep.mubr.f32.mxu0 %v772_v48 }
 0x41e   :  { %1783 = vmatmul.mubr.f32.vlgmr.msra.gmra.mrb[32].mxu0 %v773_v50  ;;  %v775_v54 = vmax.f32 %v709_v51, 0.0 }
 0x41f   :  { %v774_v40 = vmax.f32 %v704_v41, 0.0  ;;  %v1734_v53 = vpop.f32.mrb[20].mxu1 }
 0x420   :  { %v719_v55 = vadd.f32 %v1734_v53, %v1332_v43  ;;  %v713_v56 = vpop.f32.mrb[21].mxu1 }
 0x421   :  { %v714_v57 = vadd.f32 %v1332_v43, %v713_v56  ;;  %1785 = vmatprep.mubr.f32.mxu0 %v774_v40 }
 0x422   :  { %1786 = vmatmul.mubr.f32.gmra.mrb[34].mxu0 %v775_v54  ;;  %v777_v60 = vmax.f32 %v719_v55, 0.0 }
 0x423   :  { %v776_v58 = vmax.f32 %v714_v57, 0.0  ;;  %v1737_v59 = vpop.f32.mrb[22].mxu1 }
 0x424   :  { %v729_v61 = vadd.f32 %v1737_v59, %v1332_v43  ;;  %v723_v62 = vpop.f32.mrb[23].mxu1 }
 0x425   :  { %v724_v63 = vadd.f32 %v1332_v43, %v723_v62  ;;  %1788 = vmatprep.mubr.f32.mxu0 %v776_v58 }
 0x426   :  { %1789 = vmatmul.mubr.f32.gmra.mrb[36].mxu0 %v777_v60  ;;  %v779_v2 = vmax.f32 %v729_v61, 0.0 }
 0x427   :  { %v778_v0 = vmax.f32 %v724_v63, 0.0  ;;  %v1740_v1 = vpop.f32.mrb[24].mxu1 }
 0x428   :  { %v739_v3 = vadd.f32 %v1740_v1, %v1332_v43  ;;  %v733_v4 = vpop.f32.mrb[25].mxu1 }
 0x429   :  { %v734_v5 = vadd.f32 %v1332_v43, %v733_v4  ;;  %1791 = vmatprep.mubr.f32.mxu0 %v778_v0 }
 0x42a   :  { %1792 = vmatmul.mubr.f32.gmra.mrb[38].mxu0 %v779_v2  ;;  %v781_v8 = vmax.f32 %v739_v3, 0.0 }
 0x42b   :  { %v780_v6 = vmax.f32 %v734_v5, 0.0  ;;  %v1743_v7 = vpop.f32.mrb[26].mxu1 }
 0x42c   :  { %v749_v9 = vadd.f32 %v1743_v7, %v1332_v43  ;;  %v743_v10 = vpop.f32.mrb[27].mxu1 }
 0x42d   :  { %v744_v11 = vadd.f32 %v1332_v43, %v743_v10  ;;  %1794 = vmatprep.mubr.f32.mxu0 %v780_v6 }
 0x42e   :  { %1795 = vmatmul.mubr.f32.gmra.mrb[40].mxu0 %v781_v8  ;;  %v783_v14 = vmax.f32 %v749_v9, 0.0 }
 0x42f   :  { %v782_v12 = vmax.f32 %v744_v11, 0.0  ;;  %v1746_v13 = vpop.f32.mrb[28].mxu1 }
 0x430   :  { %v759_v15 = vadd.f32 %v1746_v13, %v1332_v43  ;;  %v753_v16 = vpop.f32.mrb[29].mxu1 }
 0x431   :  { %v754_v17 = vadd.f32 %v1332_v43, %v753_v16  ;;  %1797 = vmatprep.mubr.f32.mxu0 %v782_v12 }
 0x432   :  { %1798 = vmatmul.mubr.f32.gmra.mrb[42].mxu0 %v783_v14  ;;  %v785_v20 = vmax.f32 %v759_v15, 0.0 }
 0x433   :  { %v784_v18 = vmax.f32 %v754_v17, 0.0  ;;  %v1749_v19 = vpop.f32.mrb[30].mxu1 }
 0x434   :  { %v769_v21 = vadd.f32 %v1749_v19, %v1332_v43  ;;  %v763_v37 = vpop.f32.mrb[31].mxu1 }
 0x435   :  { %v764_v38 = vadd.f32 %v1332_v43, %v763_v37  ;;  %1800 = vmatprep.mubr.f32.mxu0 %v784_v18 }
 0x436   :  { %1801 = vmatmul.mubr.f32.gmra.mrb[44].mxu0 %v785_v20  ;;  %v787_v42 = vmax.f32 %v769_v21, 0.0 }
 0x437   :  { %v786_v39 = vmax.f32 %v764_v38, 0.0 }
 0x439   :  { %1803 = vmatprep.mubr.f32.mxu0 %v786_v39 }
 0x43a   :  { %1804 = vmatmul.mubr.f32.gmra.mrb[46].mxu0 %v787_v42 }
 0x4f1   :  { %v1784_v44 = vpop.f32.mrb[32].mxu0 }
 0x4f2   :  { %v871_v45 = vpop.f32.mrb[33].mxu0 }
 0x4f3   :  { %v2022_v46 = vpack.c.bf16 %v1784_v44, %v871_v45 }
 0x4f5   :  { %v1787_v47 = vpop.f32.mrb[34].mxu0  ;;  %2023 = vmatprep.subr.bf16.mxu1 %v2022_v46 }
 0x4f6   :  { %v881_v48 = vpop.f32.mrb[35].mxu0  ;;  %2025 = vmatpush3.bf16.msra.mxu1 %v2022_v46 }
 0x4f7   :  { %v2026_v49 = vpack.c.bf16 %v1787_v47, %v881_v48 }
 0x4f9   :  { %v1790_v50 = vpop.f32.mrb[36].mxu0  ;;  %2027 = vmatprep.subr.bf16.mxu1 %v2026_v49 }
 0x4fa   :  { %v891_v51 = vpop.f32.mrb[37].mxu0  ;;  %2029 = vmatpush3.bf16.msra.mxu1 %v2026_v49 }
 0x4fb   :  { %v2030_v52 = vpack.c.bf16 %v1790_v50, %v891_v51 }
 0x4fd   :  { %v1793_v43 = vpop.f32.mrb[38].mxu0  ;;  %2031 = vmatprep.subr.bf16.mxu1 %v2030_v52 }
 0x4fe   :  { %v901_v41 = vpop.f32.mrb[39].mxu0  ;;  %2033 = vmatpush3.bf16.msra.mxu1 %v2030_v52 }
 0x4ff   :  { %v2034_v40 = vpack.c.bf16 %v1793_v43, %v901_v41 }
 0x501   :  { %v1796_v53 = vpop.f32.mrb[40].mxu0  ;;  %2035 = vmatprep.subr.bf16.mxu1 %v2034_v40 }
 0x502   :  { %v911_v54 = vpop.f32.mrb[41].mxu0  ;;  %2037 = vmatpush3.bf16.msra.mxu1 %v2034_v40 }
 0x503   :  { %v2038_v55 = vpack.c.bf16 %v1796_v53, %v911_v54 }
 0x505   :  { %v1799_v56 = vpop.f32.mrb[42].mxu0  ;;  %2039 = vmatprep.subr.bf16.mxu1 %v2038_v55 }
 0x506   :  { %v921_v57 = vpop.f32.mrb[43].mxu0  ;;  %2041 = vmatpush3.bf16.msra.mxu1 %v2038_v55 }
 0x507   :  { %v2042_v58 = vpack.c.bf16 %v1799_v56, %v921_v57 }
 0x509   :  { %v1802_v59 = vpop.f32.mrb[44].mxu0  ;;  %2043 = vmatprep.subr.bf16.mxu1 %v2042_v58 }
 0x50a   :  { %v931_v60 = vpop.f32.mrb[45].mxu0  ;;  %2045 = vmatpush3.bf16.msra.mxu1 %v2042_v58 }
 0x50b   :  { %v2046_v61 = vpack.c.bf16 %v1802_v59, %v931_v60 }
 0x50d   :  { %v1805_v62 = vpop.f32.mrb[46].mxu0  ;;  %2047 = vmatprep.subr.bf16.mxu1 %v2046_v61 }
 0x50e   :  { %v941_v63 = vpop.f32.mrb[47].mxu0  ;;  %2049 = vmatpush3.bf16.msra.mxu1 %v2046_v61 }
 0x50f   :  { %v2050_v0 = vpack.c.bf16 %v1805_v62, %v941_v63 }
 0x511   :  { %2051 = vmatprep.subr.bf16.mxu1 %v2050_v0 }
 0x512   :  { %2053 = vmatpush3.bf16.msra.mxu1 %v2050_v0 }
 0x515   :  { %1839 = vmatmul.mubr.f32.vlgmr.msra.gmra.mrb[32].mxu1 %v2411_v22  ;;  %v1101_v22 = vlaneseq }
 0x516   :  { %1841 = vmatprep.mubr.f32.mxu1 %v2413_v23 }
 0x517   :  { %v2494_v23 = vand.u32 127, %v1101_v22 }
 0x519   :  { %1842 = vmatmul.mubr.f32.gmra.mrb[34].mxu1 %v2417_v24  ;;  %v1333_v24 = vld [vmem:[%s2678_s7] ss:$0 sm:$0xff]  ;;  %vm1103_vm0 = vcmp.lt.s32.totalorder %v2494_v23, 8  ;;  %s2273_s7 = smov [#allocation11]  }
 0x51a   :  { %1844 = vmatprep.mubr.f32.mxu1 %v2419_v25  ;;  %s1317_s24 = sshll.u32 %s2273_s7, 4  ;;  %s1318_s24 = int_to_ptr.vmem [resolvable:$true] %s1317_s24 }
 0x51b   :  { %s2236_s25 = scalar_lea.vmem %s1318_s24, 2048  ;;  %p2241_p13 = scmp.lt.s32.totalorder %s1318_s24, %s1318_s24 }
 0x51c   :  { %p2237_p12 = scmp.ne.s32.totalorder %s1318_s24, %s2236_s25  ;;  %p2242_p0 = scmp.lt.s32.totalorder %s2236_s25, %s2236_s25 }
 0x51d   :  { %1845 = vmatmul.mubr.f32.gmra.mrb[36].mxu1 %v2423_v26 }
 0x51e   :  { %1847 = vmatprep.mubr.f32.mxu1 %v2425_v27  ;;  %p2243_p1 = por %p2242_p0, %p2241_p13 }
 0x520   :  { %p2244_p2 = pnand %p2243_p1, %p2237_p12 }
 0x521   :  { %1848 = vmatmul.mubr.f32.gmra.mrb[38].mxu1 %v2429_v28 }
 0x522   :  { %1850 = vmatprep.mubr.f32.mxu1 %v2431_v29 }
 0x525   :  { %1851 = vmatmul.mubr.f32.gmra.mrb[40].mxu1 %v2435_v30 }
 0x526   :  { %1853 = vmatprep.mubr.f32.mxu1 %v2437_v31 }
 0x529   :  { %1854 = vmatmul.mubr.f32.gmra.mrb[42].mxu1 %v2441_v32 }
 0x52a   :  { %1856 = vmatprep.mubr.f32.mxu1 %v2443_v33 }
 0x52d   :  { %1857 = vmatmul.mubr.f32.gmra.mrb[44].mxu1 %v2447_v34 }
 0x52e   :  { %1859 = vmatprep.mubr.f32.mxu1 %v2449_v35 }
 0x531   :  { %1860 = vmatmul.mubr.f32.gmra.mrb[46].mxu1 %v2453_v36 }
 0x5e8   :  { %v1840_v25 = vpop.f32.mrb[32].mxu1 }
 0x5e9   :  { %v1028_v26 = vadd.f32 %v1840_v25, %v1333_v24  ;;  %v1022_v27 = vpop.f32.mrb[33].mxu1 }
 0x5ea   :  { %v1023_v28 = vadd.f32 %v1333_v24, %v1022_v27 }
 0x5eb   :  { %v1105_v29 = vsel %vm1103_vm0, %v1028_v26, -1e+30 }
 0x5ec   :  { %1122 = vmax.xlane.f32.xlu0 %v1105_v29  ;;  %v1843_v30 = vpop.f32.mrb[34].mxu1  ;;  %v1104_v35 = vsel %vm1103_vm0, %v1023_v28, -1e+30 }
 0x5ed   :  { %v1038_v31 = vadd.f32 %v1843_v30, %v1333_v24  ;;  %v1032_v32 = vpop.f32.mrb[35].mxu1 }
 0x5ee   :  { %v1033_v33 = vadd.f32 %v1333_v24, %v1032_v32 }
 0x5ef   :  { %v1107_v34 = vsel %vm1103_vm0, %v1038_v31, -1e+30 }
 0x5f0   :  { %1126 = vmax.xlane.f32.xlu1 %v1107_v34  ;;  %v1846_v36 = vpop.f32.mrb[36].mxu1  ;;  %1120 = vmax.xlane.f32.xlu0 %v1104_v35  ;;  %v1106_v4 = vsel %vm1103_vm0, %v1033_v33, -1e+30 }
 0x5f1   :  { %v1048_v1 = vadd.f32 %v1846_v36, %v1333_v24  ;;  %v1042_v2 = vpop.f32.mrb[37].mxu1 }
 0x5f2   :  { %v1043_v3 = vadd.f32 %v1333_v24, %v1042_v2 }
 0x5f3   :  { %v1109_v9 = vsel %vm1103_vm0, %v1048_v1, -1e+30 }
 0x5f4   :  { %v1849_v5 = vpop.f32.mrb[38].mxu1  ;;  %1124 = vmax.xlane.f32.xlu1 %v1106_v4  ;;  %v1108_v6 = vsel %vm1103_vm0, %v1043_v3, -1e+30 }
 0x5f5   :  { %v1058_v7 = vadd.f32 %v1849_v5, %v1333_v24  ;;  %v1052_v8 = vpop.f32.mrb[39].mxu1  ;;  %1128 = vmax.xlane.f32.xlu0 %v1108_v6 }
 0x5f6   :  { %v1053_v10 = vadd.f32 %v1333_v24, %v1052_v8 }
 0x5f7   :  { %v1111_v15 = vsel %vm1103_vm0, %v1058_v7, -1e+30 }
 0x5f8   :  { %v1852_v11 = vpop.f32.mrb[40].mxu1  ;;  %1130 = vmax.xlane.f32.xlu1 %v1109_v9  ;;  %v1110_v12 = vsel %vm1103_vm0, %v1053_v10, -1e+30 }
 0x5f9   :  { %v1068_v13 = vadd.f32 %v1852_v11, %v1333_v24  ;;  %v1062_v14 = vpop.f32.mrb[41].mxu1  ;;  %1132 = vmax.xlane.f32.xlu0 %v1110_v12 }
 0x5fa   :  { %v1063_v16 = vadd.f32 %v1333_v24, %v1062_v14 }
 0x5fb   :  { %v2520_v21 = vsel %vm1103_vm0, %v1068_v13, -1e+30 }
 0x5fc   :  { %v1855_v17 = vpop.f32.mrb[42].mxu1  ;;  %1134 = vmax.xlane.f32.xlu1 %v1111_v15  ;;  %v1112_v18 = vsel %vm1103_vm0, %v1063_v16, -1e+30 }
 0x5fd   :  { %v1078_v19 = vadd.f32 %v1855_v17, %v1333_v24  ;;  %v1072_v20 = vpop.f32.mrb[43].mxu1  ;;  %1136 = vmax.xlane.f32.xlu0 %v1112_v18 }
 0x5fe   :  { %v1073_v37 = vadd.f32 %v1333_v24, %v1072_v20 }
 0x5ff   :  { %v2530_v45 = vsel %vm1103_vm0, %v1078_v19, -1e+30 }
 0x600   :  { %v1858_v38 = vpop.f32.mrb[44].mxu1  ;;  %1138 = vmax.xlane.f32.xlu1 %v2520_v21  ;;  %v2525_v39 = vsel %vm1103_vm0, %v1073_v37, -1e+30 }
 0x601   :  { %v1088_v42 = vadd.f32 %v1858_v38, %v1333_v24  ;;  %v1082_v44 = vpop.f32.mrb[45].mxu1  ;;  %1140 = vmax.xlane.f32.xlu0 %v2525_v39 }
 0x602   :  { %v1083_v46 = vadd.f32 %v1333_v24, %v1082_v44 }
 0x603   :  { %v2540_v51 = vsel %vm1103_vm0, %v1088_v42, -1e+30 }
 0x604   :  { %v1861_v47 = vpop.f32.mrb[46].mxu1  ;;  %1142 = vmax.xlane.f32.xlu1 %v2530_v45  ;;  %v2535_v48 = vsel %vm1103_vm0, %v1083_v46, -1e+30 }
 0x605   :  { %v1098_v49 = vadd.f32 %v1861_v47, %v1333_v24  ;;  %v1092_v50 = vpop.f32.mrb[47].mxu1  ;;  %1144 = vmax.xlane.f32.xlu0 %v2535_v48 }
 0x606   :  { %v1093_v52 = vadd.f32 %v1333_v24, %v1092_v50 }
 0x607   :  { %v2550_v41 = vsel %vm1103_vm0, %v1098_v49, -1e+30 }
 0x608   :  { %1146 = vmax.xlane.f32.xlu1 %v2540_v51  ;;  %v2545_v43 = vsel %vm1103_vm0, %v1093_v52, -1e+30 }
 0x609   :  { %1148 = vmax.xlane.f32.xlu0 %v2545_v43 }
 0x60c   :  { %1150 = vmax.xlane.f32.xlu1 %v2550_v41 }
 0x679   :  { %v1123_v40 = vpop.xlane.xlu0 %1122 }
 0x67a   :  { %v2553_v53 = vsub.f32 %v1105_v29, %v1123_v40 }
 0x67c   :  { %v1170_v54 = vmul.f32 1.442695, %v2553_v53 }
 0x67d   :  { %v1127_v55 = vpop.xlane.xlu1 %1126  ;;  %v1121_v56 = vpop.xlane.xlu0 %1120 }
 0x67e   :  { %2062 = vpow2.f32 %v1170_v54  ;;  %v2556_v57 = vsub.f32 %v1107_v34, %v1127_v55  ;;  %v2558_v58 = vsub.f32 %v1104_v35, %v1121_v56 }
 0x680   :  { %v1174_v59 = vmul.f32 1.442695, %v2556_v57  ;;  %v1168_v60 = vmul.f32 1.442695, %v2558_v58 }
 0x681   :  { %v1125_v61 = vpop.xlane.xlu1 %1124 }
 0x682   :  { %2064 = vpow2.f32 %v1174_v59  ;;  %v2562_v62 = vsub.f32 %v1106_v4, %v1125_v61  ;;  %v1129_v63 = vpop.xlane.xlu0 %1128 }
 0x683   :  { %2066 = vpow2.f32 %v1168_v60  ;;  %v2564_v0 = vsub.f32 %v1108_v6, %v1129_v63 }
 0x684   :  { %v1172_v22 = vmul.f32 1.442695, %v2562_v62 }
 0x685   :  { %v1176_v24 = vmul.f32 1.442695, %v2564_v0  ;;  %v1131_v25 = vpop.xlane.xlu1 %1130 }
 0x686   :  { %2068 = vpow2.f32 %v1172_v22  ;;  %v2568_v26 = vsub.f32 %v1109_v9, %v1131_v25  ;;  %v1133_v27 = vpop.xlane.xlu0 %1132 }
 0x687   :  { %v2570_v28 = vsub.f32 %v1110_v12, %v1133_v27  ;;  %2070 = vpow2.f32 %v1176_v24 }
 0x688   :  { %v2063_v29 = vpop.eup %2062  ;;  %v1178_v30 = vmul.f32 1.442695, %v2568_v26 }
 0x689   :  { %v1180_v31 = vmul.f32 1.442695, %v2570_v28  ;;  %v1135_v32 = vpop.xlane.xlu1 %1134  ;;  %v1201_v33 = vsel %vm1103_vm0, %v2063_v29, 0.0 }
 0x68a   :  { %2072 = vpow2.f32 %v1178_v30  ;;  %v2576_v34 = vsub.f32 %v1111_v15, %v1135_v32  ;;  %1218 = vadd.xlane.f32.xlu1 %v1201_v33  ;;  %v1137_v35 = vpop.xlane.xlu0 %1136 }
 0x68b   :  { %v2578_v36 = vsub.f32 %v1112_v18, %v1137_v35  ;;  %2074 = vpow2.f32 %v1180_v31 }
 0x68c   :  { %v2065_v1 = vpop.eup %2064  ;;  %v1182_v2 = vmul.f32 1.442695, %v2576_v34 }
 0x68d   :  { %v2067_v3 = vpop.eup %2066  ;;  %v1184_v4 = vmul.f32 1.442695, %v2578_v36  ;;  %v1139_v5 = vpop.xlane.xlu1 %1138  ;;  %v1203_v6 = vsel %vm1103_vm0, %v2065_v1, 0.0 }
 0x68e   :  { %2076 = vpow2.f32 %v1182_v2  ;;  %v2585_v7 = vsub.f32 %v2520_v21, %v1139_v5  ;;  %1222 = vadd.xlane.f32.xlu1 %v1203_v6  ;;  %v1200_v8 = vsel %vm1103_vm0, %v2067_v3, 0.0  ;;  %v1141_v9 = vpop.xlane.xlu0 %1140 }
 0x68f   :  { %1216 = vadd.xlane.f32.xlu0 %v1200_v8  ;;  %v2590_v10 = vsub.f32 %v2525_v39, %v1141_v9  ;;  %2078 = vpow2.f32 %v1184_v4 }
 0x690   :  { %v2069_v11 = vpop.eup %2068  ;;  %v1186_v12 = vmul.f32 1.442695, %v2585_v7 }
 0x691   :  { %v1188_v13 = vmul.f32 1.442695, %v2590_v10  ;;  %v1143_v14 = vpop.xlane.xlu1 %1142  ;;  %v1202_v15 = vsel %vm1103_vm0, %v2069_v11, 0.0  ;;  %v2071_v18 = vpop.eup %2070 }
 0x692   :  { %2080 = vpow2.f32 %v1186_v12  ;;  %v2597_v16 = vsub.f32 %v2530_v45, %v1143_v14  ;;  %v1145_v17 = vpop.xlane.xlu0 %1144  ;;  %v1204_v44 = vsel %vm1103_vm0, %v2071_v18, 0.0 }
 0x693   :  { %1220 = vadd.xlane.f32.xlu0 %v1202_v15  ;;  %v2600_v19 = vsub.f32 %v2535_v48, %v1145_v17  ;;  %2082 = vpow2.f32 %v1188_v13 }
 0x694   :  { %v2073_v20 = vpop.eup %2072  ;;  %v1190_v21 = vmul.f32 1.442695, %v2597_v16 }
 0x695   :  { %v1192_v37 = vmul.f32 1.442695, %v2600_v19  ;;  %v1147_v38 = vpop.xlane.xlu1 %1146  ;;  %v1205_v39 = vsel %vm1103_vm0, %v2073_v20, 0.0  ;;  %v2075_v46 = vpop.eup %2074 }
 0x696   :  { %2084 = vpow2.f32 %v1190_v21  ;;  %v2607_v42 = vsub.f32 %v2540_v51, %v1147_v38  ;;  %1226 = vadd.xlane.f32.xlu1 %v1205_v39  ;;  %v1149_v45 = vpop.xlane.xlu0 %1148  ;;  %v1206_v54 = vsel %vm1103_vm0, %v2075_v46, 0.0 }
 0x697   :  { %1224 = vadd.xlane.f32.xlu0 %v1204_v44  ;;  %v2612_v47 = vsub.f32 %v2545_v43, %v1149_v45  ;;  %2086 = vpow2.f32 %v1192_v37 }
 0x698   :  { %v2077_v48 = vpop.eup %2076  ;;  %v1194_v49 = vmul.f32 1.442695, %v2607_v42 }
 0x699   :  { %v1196_v50 = vmul.f32 1.442695, %v2612_v47  ;;  %v1151_v52 = vpop.xlane.xlu1 %1150  ;;  %v1207_v51 = vsel %vm1103_vm0, %v2077_v48, 0.0  ;;  %v2079_v43 = vpop.eup %2078 }
 0x69a   :  { %2088 = vpow2.f32 %v1194_v49  ;;  %v2619_v40 = vsub.f32 %v2550_v41, %v1151_v52  ;;  %1230 = vadd.xlane.f32.xlu1 %v1207_v51  ;;  %v1208_v60 = vsel %vm1103_vm0, %v2079_v43, 0.0 }
 0x69b   :  { %1228 = vadd.xlane.f32.xlu0 %v1206_v54  ;;  %2090 = vpow2.f32 %v1196_v50 }
 0x69c   :  { %v2081_v55 = vpop.eup %2080  ;;  %v1198_v56 = vmul.f32 1.442695, %v2619_v40 }
 0x69d   :  { %v1209_v59 = vsel %vm1103_vm0, %v2081_v55, 0.0  ;;  %v2083_v41 = vpop.eup %2082 }
 0x69e   :  { %2092 = vpow2.f32 %v1198_v56  ;;  %1234 = vadd.xlane.f32.xlu1 %v1209_v59  ;;  %v1210_v22 = vsel %vm1103_vm0, %v2083_v41, 0.0 }
 0x69f   :  { %1232 = vadd.xlane.f32.xlu0 %v1208_v60 }
 0x6a0   :  { %v2085_v61 = vpop.eup %2084 }
 0x6a1   :  { %v1211_v63 = vsel %vm1103_vm0, %v2085_v61, 0.0  ;;  %v2087_v24 = vpop.eup %2086 }
 0x6a2   :  { %1238 = vadd.xlane.f32.xlu1 %v1211_v63  ;;  %v1212_v29 = vsel %vm1103_vm0, %v2087_v24, 0.0 }
 0x6a3   :  { %1236 = vadd.xlane.f32.xlu0 %v1210_v22 }
 0x6a4   :  { %v2089_v25 = vpop.eup %2088 }
 0x6a5   :  { %v1213_v27 = vsel %vm1103_vm0, %v2089_v25, 0.0  ;;  %v2091_v30 = vpop.eup %2090 }
 0x6a6   :  { %1242 = vadd.xlane.f32.xlu1 %v1213_v27  ;;  %v1214_v33 = vsel %vm1103_vm0, %v2091_v30, 0.0 }
 0x6a7   :  { %1240 = vadd.xlane.f32.xlu0 %v1212_v29 }
 0x6a8   :  { %v2093_v31 = vpop.eup %2092 }
 0x6a9   :  { %v1215_v32 = vsel %vm1103_vm0, %v2093_v31, 0.0 }
 0x6aa   :  { %1246 = vadd.xlane.f32.xlu1 %v1215_v32 }
 0x6ab   :  { %1244 = vadd.xlane.f32.xlu0 %v1214_v33 }
 0x717   :  { %v1219_v35 = vpop.xlane.xlu1 %1218 }
 0x718   :  { %2094 = vlog2.f32 %v1219_v35 }
 0x71b   :  { %v1223_v1 = vpop.xlane.xlu1 %1222 }
 0x71c   :  { %2096 = vlog2.f32 %v1223_v1  ;;  %v1217_v2 = vpop.xlane.xlu0 %1216 }
 0x71d   :  { %2098 = vlog2.f32 %v1217_v2 }
 0x720   :  { %v1221_v3 = vpop.xlane.xlu0 %1220 }
 0x721   :  { %2100 = vlog2.f32 %v1221_v3 }
 0x722   :  { %v2095_v4 = vpop.eup %2094 }
 0x723   :  { %v1251_v5 = vmul.f32 0.6931472, %v2095_v4  ;;  %v1227_v6 = vpop.xlane.xlu1 %1226 }
 0x724   :  { %2102 = vlog2.f32 %v1227_v6  ;;  %v1225_v8 = vpop.xlane.xlu0 %1224 }
 0x725   :  { %v1281_v9 = vsub.f32 %v2553_v53, %v1251_v5  ;;  %2104 = vlog2.f32 %v1225_v8 }
 0x726   :  { %v2097_v11 = vpop.eup %2096 }
 0x727   :  { %v2099_v23 = vpop.eup %2098  ;;  %1297 = vst [vmem:[#allocation11 + $0x8] sm:$0xff] %v1281_v9  ;;  %v1255_v12 = vmul.f32 0.6931472, %v2097_v11  ;;  %v1231_v13 = vpop.xlane.xlu1 %1230 }
 0x728   :  { %v1249_v14 = vmul.f32 0.6931472, %v2099_v23  ;;  %2106 = vlog2.f32 %v1231_v13  ;;  %v1229_v15 = vpop.xlane.xlu0 %1228 }
 0x729   :  { %v1283_v17 = vsub.f32 %v2556_v57, %v1255_v12  ;;  %2108 = vlog2.f32 %v1229_v15 }
 0x72a   :  { %v1280_v18 = vsub.f32 %v2558_v58, %v1249_v14 }
 0x72b   :  { %v2101_v20 = vpop.eup %2100  ;;  %1299 = vst [vmem:[#allocation11 + $0x18] sm:$0xff] %v1283_v17  ;;  %v1235_v21 = vpop.xlane.xlu1 %1234 }
 0x72c   :  { %1296 = vst [vmem:[#allocation11] sm:$0xff] %v1280_v18  ;;  %v1253_v37 = vmul.f32 0.6931472, %v2101_v20  ;;  %2110 = vlog2.f32 %v1235_v21  ;;  %v1233_v53 = vpop.xlane.xlu0 %1232 }
 0x72d   :  { %2112 = vlog2.f32 %v1233_v53 }
 0x72e   :  { %v2103_v38 = vpop.eup %2102  ;;  %v1282_v39 = vsub.f32 %v2562_v62, %v1253_v37 }
 0x72f   :  { %v2105_v44 = vpop.eup %2104  ;;  %v1259_v45 = vmul.f32 0.6931472, %v2103_v38  ;;  %v1239_v46 = vpop.xlane.xlu1 %1238 }
 0x730   :  { %1298 = vst [vmem:[#allocation11 + $0x10] sm:$0xff] %v1282_v39  ;;  %v1257_v48 = vmul.f32 0.6931472, %v2105_v44  ;;  %2114 = vlog2.f32 %v1239_v46  ;;  %v1237_v57 = vpop.xlane.xlu0 %1236 }
 0x731   :  { %v1285_v58 = vsub.f32 %v2568_v26, %v1259_v45  ;;  %2116 = vlog2.f32 %v1237_v57 }
 0x732   :  { %v2107_v49 = vpop.eup %2106  ;;  %v1284_v50 = vsub.f32 %v2564_v0, %v1257_v48 }
 0x733   :  { %v2109_v52 = vpop.eup %2108  ;;  %1301 = vst [vmem:[#allocation11 + $0x28] sm:$0xff] %v1285_v58  ;;  %v1263_v51 = vmul.f32 0.6931472, %v2107_v49  ;;  %v1243_v54 = vpop.xlane.xlu1 %1242 }
 0x734   :  { %1300 = vst [vmem:[#allocation11 + $0x20] sm:$0xff] %v1284_v50  ;;  %v1261_v43 = vmul.f32 0.6931472, %v2109_v52  ;;  %2118 = vlog2.f32 %v1243_v54  ;;  %v1241_v62 = vpop.xlane.xlu0 %1240 }
 0x735   :  { %v1287_v55 = vsub.f32 %v2576_v34, %v1263_v51  ;;  %2120 = vlog2.f32 %v1241_v62 }
 0x736   :  { %v2111_v56 = vpop.eup %2110  ;;  %v1286_v59 = vsub.f32 %v2570_v28, %v1261_v43 }
 0x737   :  { %v2113_v60 = vpop.eup %2112  ;;  %1303 = vst [vmem:[#allocation11 + $0x38] sm:$0xff] %v1287_v55  ;;  %v1267_v26 = vmul.f32 0.6931472, %v2111_v56  ;;  %v1247_v41 = vpop.xlane.xlu1 %1246 }
 0x738   :  { %1302 = vst [vmem:[#allocation11 + $0x30] sm:$0xff] %v1286_v59  ;;  %v1265_v0 = vmul.f32 0.6931472, %v2113_v60  ;;  %2122 = vlog2.f32 %v1247_v41  ;;  %v1245_v61 = vpop.xlane.xlu0 %1244 }
 0x739   :  { %v1289_v63 = vsub.f32 %v2585_v7, %v1267_v26  ;;  %2124 = vlog2.f32 %v1245_v61 }
 0x73a   :  { %v2115_v22 = vpop.eup %2114  ;;  %v1288_v24 = vsub.f32 %v2578_v36, %v1265_v0 }
 0x73b   :  { %v2117_v25 = vpop.eup %2116  ;;  %1305 = vst [vmem:[#allocation11 + $0x48] sm:$0xff] %v1289_v63  ;;  %v1271_v34 = vmul.f32 0.6931472, %v2115_v22 }
 0x73c   :  { %1304 = vst [vmem:[#allocation11 + $0x40] sm:$0xff] %v1288_v24  ;;  %v1269_v27 = vmul.f32 0.6931472, %v2117_v25 }
 0x73d   :  { %v1291_v28 = vsub.f32 %v2597_v16, %v1271_v34 }
 0x73e   :  { %v2119_v29 = vpop.eup %2118  ;;  %v1290_v30 = vsub.f32 %v2590_v10, %v1269_v27 }
 0x73f   :  { %v2121_v31 = vpop.eup %2120  ;;  %1307 = vst [vmem:[#allocation11 + $0x58] sm:$0xff] %v1291_v28  ;;  %v1275_v32 = vmul.f32 0.6931472, %v2119_v29 }
 0x740   :  { %1306 = vst [vmem:[#allocation11 + $0x50] sm:$0xff] %v1290_v30  ;;  %v1273_v33 = vmul.f32 0.6931472, %v2121_v31 }
 0x741   :  { %v1293_v7 = vsub.f32 %v2607_v42, %v1275_v32 }
 0x742   :  { %v2123_v35 = vpop.eup %2122  ;;  %v1292_v36 = vsub.f32 %v2600_v19, %v1273_v33 }
 0x743   :  { %v2125_v1 = vpop.eup %2124  ;;  %1309 = vst [vmem:[#allocation11 + $0x68] sm:$0xff] %v1293_v7  ;;  %v1279_v2 = vmul.f32 0.6931472, %v2123_v35 }
 0x744   :  { %1308 = vst [vmem:[#allocation11 + $0x60] sm:$0xff] %v1292_v36  ;;  %v1277_v16 = vmul.f32 0.6931472, %v2125_v1 }
 0x745   :  { %v1295_v3 = vsub.f32 %v2619_v40, %v1279_v2 }
 0x746   :  { %v1294_v10 = vsub.f32 %v2612_v47, %v1277_v16 }
 0x747   :  { %1311 = vst [vmem:[#allocation11 + $0x78] sm:$0xff] %v1295_v3 }
 0x748   :  { %1310 = vst [vmem:[#allocation11 + $0x70] sm:$0xff] %v1294_v10 }
 0x749   :  { %2247 = shalt.err (!%p2244_p2)
}
 0x74a   :  { %s2248_s29 = scalar_lea.hbm %s2679_s8, 2048 }
 0x74b   :  { %p2249_p3 = scmp.ne.s32.totalorder %s2679_s8, %s2248_s29  ;;  %p2252_p4 = scmp.lt.u32.totalorder %s2248_s29, %s2679_s8 }
 0x74d   :  { %p2254_p5 = pnand %p2252_p4, %p2249_p3 }
 0x74f   :  { %2257 = shalt.err (!%p2254_p5)
}
 0x750   :  { %1323 = dma.vmem_to_hbm [thread:$0]  %s1318_s24, 2048, %s2679_s8, [#allocation4], %s2268_s17, %s2268_s17, %s2269_s18  }
 0x751   :  { %2264 = dma.done.wait [#allocation4], 2048  }
 0x752   :  { %2265 = vsyncadd [#allocation4], 4294965248 }
 0x753   :  { %1327 = vsyncpa [#allocation3], 1 }
 0x754   :  { %1328 = vsyncpa [#allocation6], 1 }
 0x755   :  { %1329 = vsyncpa [#allocation9], 1 }
 0x756   :  { %1330 = vsyncpa [#allocation4], 1 }

</bundles_post_ra>
